<compile_context>
chip_gen: v6e
topology: v6e:2x2x1
jax: 0.10.0
libtpu: 0.0.40
codegen_flags: <defaults>
</compile_context>

<pallas_src>
import math

import jax
import jax.numpy as jnp
from jax.experimental import pallas as pl
from jax.experimental.pallas import tpu as pltpu

# ----------------------- configuration (mirrors __init__) -------------------
NUM_DIM = 3
GEO_FEAT_DIM = 15
N_LEVELS = 16
FEATS_PER_LEVEL = 2
LOG2_HASHMAP_SIZE = 15          # tcnn default is 19; smaller table for the demo
BASE_RESOLUTION = 16
PER_LEVEL_SCALE = 1.4472692012786865
ENC_DIM = N_LEVELS * FEATS_PER_LEVEL      # 32
SH_DIM = 16                               # SphericalHarmonics degree 4
HEAD_IN = SH_DIM + GEO_FEAT_DIM           # 31
BASE_OUT = 1 + GEO_FEAT_DIM               # 16
NEURONS = 64
HEAD_BUF = SH_DIM + BASE_OUT              # 32 staged rows for the head matmul

# Samples per grid step.  Lane-dense (multiple of 128); sweep 512/1024/2048 for
# large batches, but keep grid = n_total // TILE >= 2 so v7x can shard the
# parallel axis over its 2 TensorCores.
TILE = 512

AUX_ROWS = 4               # row 0: selector, rows 1..3: view directions (f32)
OUT_ROWS = 4               # row 0: density, rows 1..3: rgb


# --------------------- hash-grid encoding (glue, plain JAX) -----------------
# TODO(synk): tcnn uses dense (non-hashed) indexing at coarse levels and a
# slightly different per-level resolution formula; here every level is hashed.
# TODO(synk): the table gather stays in XLA — Pallas TPU has no general vector
# gather from a VMEM-resident table; an in-kernel version would need
# per-element DMAs.  It is at least fused into a single XLA gather here.
def hash_grid_encode(x01, table):
    """x01: (N,3) aabb-normalized coords; returns (ENC_DIM, N) f32 features."""
    n = x01.shape[0]
    tsize = 1 << LOG2_HASHMAP_SIZE
    primes = jnp.array([1, 2654435761, 805459861], dtype=jnp.uint32)
    res = jnp.array(
        [math.floor(BASE_RESOLUTION * (PER_LEVEL_SCALE ** lvl))
         for lvl in range(N_LEVELS)], dtype=jnp.float32)             # (L,)

    pos = x01[:, None, :] * res[None, :, None]                       # (N, L, 3)
    pos0 = jnp.floor(pos)
    frac = pos - pos0                                                # (N, L, 3)
    base_idx = pos0.astype(jnp.int32).astype(jnp.uint32)             # (N, L, 3)

    corners = jnp.array([[(c >> i) & 1 for i in range(3)]
                         for c in range(8)], dtype=jnp.uint32)       # (8, 3)
    idx = base_idx[:, :, None, :] + corners[None, None, :, :]        # (N,L,8,3)
    hsh = idx * primes
    hsh = (hsh[..., 0] ^ hsh[..., 1] ^ hsh[..., 2]) & jnp.uint32(tsize - 1)
    lvl_off = jnp.arange(N_LEVELS, dtype=jnp.uint32) * jnp.uint32(tsize)
    flat = (hsh + lvl_off[None, :, None]).astype(jnp.int32)          # (N, L, 8)

    table_flat = table.reshape(N_LEVELS * tsize, FEATS_PER_LEVEL)
    feats = table_flat[flat]                                         # (N,L,8,2)

    cf = corners.astype(jnp.float32)[None, None, :, :]               # (1,1,8,3)
    w = jnp.prod(cf * frac[:, :, None, :]
                 + (1.0 - cf) * (1.0 - frac[:, :, None, :]), axis=-1)  # (N,L,8)
    acc = jnp.sum(w[..., None] * feats, axis=2)                      # (N, L, 2)
    # channel-major output: row index = level * 2 + feature
    return jnp.transpose(acc, (1, 2, 0)).reshape(ENC_DIM, n)         # (32, N)


# --------------------- SH degree-4 basis (shared kernel/ref) -----------------
def sh_degree4(dx, dy, dz):
    xx, yy, zz = dx * dx, dy * dy, dz * dz
    xy, yz, xz = dx * dy, dy * dz, dx * dz
    return [
        jnp.full_like(dx, 0.28209479177387814),
        -0.48860251190291987 * dy,
        0.48860251190291987 * dz,
        -0.48860251190291987 * dx,
        1.0925484305920792 * xy,
        -1.0925484305920792 * yz,
        0.94617469575755997 * zz - 0.31539156525251999,
        -1.0925484305920792 * xz,
        0.54627421529603959 * (xx - yy),
        0.59004358992664352 * dy * (-3.0 * xx + yy),
        2.8906114426405538 * xy * dz,
        0.45704579946446572 * dy * (1.0 - 5.0 * zz),
        0.3731763325901154 * dz * (5.0 * zz - 3.0),
        0.45704579946446572 * dx * (1.0 - 5.0 * zz),
        1.4453057213202769 * dz * (xx - yy),
        0.59004358992664352 * dx * (-xx + 3.0 * yy),
    ]


# ------------------------------ Pallas kernel --------------------------------
def ngp_kernel(aux_ref, enc_ref, w0t_ref, w1t_ref, h0ct_ref, h1t_ref, h2t_ref,
               out_ref, hbuf_ref):
    f32 = jnp.float32
    bf16 = jnp.bfloat16

    # ---- mlp_base: FullyFusedMLP, 1 hidden layer, 64 neurons, no bias ----
    h = jnp.maximum(
        jnp.dot(w0t_ref[...], enc_ref[...], preferred_element_type=f32),
        0.0)                                                          # (64, T)
    base = jnp.dot(w1t_ref[...], h.astype(bf16),
                   preferred_element_type=f32)                        # (16, T)

    # ---- density = trunc_exp(x - 1) * selector (forward of trunc_exp == exp)
    density = jnp.exp(base[0:1, :] - 1.0) * aux_ref[0:1, :]           # (1, T)

    # ---- direction encoding: SphericalHarmonics degree 4 ----
    # torch maps dir -> (dir+1)/2 and tcnn SH maps [0,1] back via *2-1: identity.
    dx = aux_ref[1:2, :]
    dy = aux_ref[2:3, :]
    dz = aux_ref[3:4, :]
    for i, row in enumerate(sh_degree4(dx, dy, dz)):  # (16, T) staged in VMEM
        hbuf_ref[i:i + 1, :] = row
    # rows 16..31: mlp_base output (row 16 = density logit; its head weight
    # column is zero, so no slice/concat of `base` is needed).
    hbuf_ref[SH_DIM:SH_DIM + BASE_OUT, :] = base

    # ---- mlp_head: [SH(16)|feat(15)] -> 64 relu -> 64 relu -> 3 sigmoid ----
    a = jnp.maximum(
        jnp.dot(h0ct_ref[...], hbuf_ref[...].astype(bf16),
                preferred_element_type=f32), 0.0)                     # (64, T)
    a = jnp.maximum(
        jnp.dot(h1t_ref[...], a.astype(bf16), preferred_element_type=f32), 0.0)
    rgb = jax.nn.sigmoid(
        jnp.dot(h2t_ref[...], a.astype(bf16), preferred_element_type=f32))  # (3,T)

    # single fused, lane-dense output block: row 0 density, rows 1..3 rgb
    out_ref[0:1, :] = density
    out_ref[1:OUT_ROWS, :] = rgb


# ------------------------------- wrapper -------------------------------------
def ngp_forward(positions, directions, params):
    aabb = params["aabb"]
    aabb_min, aabb_max = aabb[:NUM_DIM], aabb[NUM_DIM:]
    x01 = (positions - aabb_min) / (aabb_max - aabb_min)              # (N, 3)

    # channel-major hash features, bf16 at HBM (MXU operand dtype anyway)
    enc_t = hash_grid_encode(x01, params["hash_table"]).astype(jnp.bfloat16)
    # selector = all coords strictly inside (0, 1)
    selector = jnp.all((x01 > 0.0) & (x01 < 1.0), axis=-1)            # (N,)
    aux = jnp.concatenate(
        [selector.astype(jnp.float32)[None, :], directions.T], axis=0)  # (4, N)

    n = positions.shape[0]
    n_total = pl.cdiv(n, TILE) * TILE
    n_pad = n_total - n
    aux = jnp.pad(aux, ((0, 0), (0, n_pad)))
    enc_t = jnp.pad(enc_t, ((0, 0), (0, n_pad)))

    full = lambda shape: pl.BlockSpec(shape, lambda i: (0, 0))

    out = pl.pallas_call(
        ngp_kernel,
        out_shape=jax.ShapeDtypeStruct((OUT_ROWS, n_total), jnp.float32),
        grid=(n_total // TILE,),
        in_specs=[
            pl.BlockSpec((AUX_ROWS, TILE), lambda i: (0, i)),  # selector + dirs
            pl.BlockSpec((ENC_DIM, TILE), lambda i: (0, i)),   # hash feats bf16
            full((NEURONS, ENC_DIM)),        # mlp_base W0^T          (64, 32)
            full((BASE_OUT, NEURONS)),       # mlp_base W1^T          (16, 64)
            full((NEURONS, HEAD_BUF)),       # mlp_head W0^T combined (64, 32)
            full((NEURONS, NEURONS)),        # mlp_head W1^T          (64, 64)
            full((3, NEURONS)),              # mlp_head W2^T          (3, 64)
        ],
        out_specs=pl.BlockSpec((OUT_ROWS, TILE), lambda i: (0, i)),
        scratch_shapes=[pltpu.VMEM((HEAD_BUF, TILE), jnp.float32)],
        compiler_params=pltpu.CompilerParams(
            dimension_semantics=("parallel",),
            vmem_limit_bytes=32 * 1024 * 1024),
    )(aux, enc_t, params["w0t"], params["w1t"], params["h0ct"],
      params["h1t"], params["h2t"])

    rgb = out[1:OUT_ROWS, :n].T                                       # (N, 3)
    density = out[0:1, :n].T                                          # (N, 1)
    # torch forward returns (rgb, density)
    return rgb, density


# ------------------- pure-JAX reference (same numerics) ----------------------
def ngp_reference(positions, directions, params):
    f32, bf16 = jnp.float32, jnp.bfloat16
    aabb = params["aabb"]
    x01 = (positions - aabb[:NUM_DIM]) / (aabb[NUM_DIM:] - aabb[:NUM_DIM])
    enc_t = hash_grid_encode(x01, params["hash_table"]).astype(bf16)  # (32, N)
    selector = jnp.all((x01 > 0.0) & (x01 < 1.0), axis=-1).astype(f32)

    h = jnp.maximum(jnp.dot(params["w0t"], enc_t, preferred_element_type=f32), 0.0)
    base = jnp.dot(params["w1t"], h.astype(bf16), preferred_element_type=f32)
    density = jnp.exp(base[0] - 1.0) * selector

    dx, dy, dz = directions[:, 0], directions[:, 1], directions[:, 2]
    sh = jnp.stack(sh_degree4(dx, dy, dz), axis=0)                    # (16, N)
    hin = jnp.concatenate([sh, base], axis=0).astype(bf16)            # (32, N)
    a = jnp.maximum(jnp.dot(params["h0ct"], hin, preferred_element_type=f32), 0.0)
    a = jnp.maximum(jnp.dot(params["h1t"], a.astype(bf16),
                            preferred_element_type=f32), 0.0)
    rgb = jax.nn.sigmoid(jnp.dot(params["h2t"], a.astype(bf16),
                                 preferred_element_type=f32))
    return rgb.T, density[:, None]


def init_params(key):
    k = jax.random.split(key, 6)
    tsize = 1 << LOG2_HASHMAP_SIZE
    hash_table = jax.random.uniform(
        k[0], (N_LEVELS, tsize, FEATS_PER_LEVEL),
        minval=-1e-4, maxval=1e-4, dtype=jnp.float32)
    scale = lambda fan_in: 1.0 / math.sqrt(fan_in)
    w0 = jax.random.uniform(k[1], (ENC_DIM, NEURONS),
                            minval=-scale(ENC_DIM), maxval=scale(ENC_DIM))
    w1 = jax.random.uniform(k[2], (NEURONS, BASE_OUT),
                            minval=-scale(NEURONS), maxval=scale(NEURONS))
    h0 = jax.random.uniform(k[3], (HEAD_IN, NEURONS),
                            minval=-scale(HEAD_IN), maxval=scale(HEAD_IN))
    h1 = jax.random.uniform(k[4], (NEURONS, NEURONS),
                            minval=-scale(NEURONS), maxval=scale(NEURONS))
    h2 = jax.random.uniform(k[5], (NEURONS, 3),
                            minval=-scale(NEURONS), maxval=scale(NEURONS))
    bf16 = jnp.bfloat16
    # combined, transposed mlp_head first layer: cols 0..15 = SH weights,
    # col 16 = 0 (absorbs the density logit row of mlp_base's output),
    # cols 17..31 = geo-feature weights.
    h0ct = jnp.concatenate(
        [h0[:SH_DIM].T, jnp.zeros((NEURONS, 1), jnp.float32), h0[SH_DIM:].T],
        axis=1)                                                       # (64, 32)
    return {
        "aabb": jnp.array([-1., -1., -1., 1., 1., 1.], dtype=jnp.float32),
        "hash_table": hash_table,
        # transposed, bf16 MXU operands (accumulation stays f32 in-kernel)
        "w0t": w0.T.astype(bf16),              # (64, 32)
        "w1t": w1.T.astype(bf16),              # (16, 64)
        "h0ct": h0ct.astype(bf16),             # (64, 32)
        "h1t": h1.T.astype(bf16),              # (64, 64)
        "h2t": h2.T.astype(bf16),              # (3, 64)
    }


if __name__ == "__main__":
    key = jax.random.PRNGKey(0)
    kp, kx, kd = jax.random.split(key, 3)
    params = init_params(kp)

    N = 1500  # not a multiple of TILE; grid = 3 tiles (>= 2 for v7x's 2 TCs)
    # positions slightly outside the aabb so the selector masks some samples
    positions = jax.random.uniform(kx, (N, NUM_DIM),
                                   minval=-1.2, maxval=1.2, dtype=jnp.float32)
    directions = jax.random.normal(kd, (N, NUM_DIM), dtype=jnp.float32)
    directions = directions / jnp.linalg.norm(directions, axis=-1, keepdims=True)

    rgb, density = jax.jit(ngp_forward)(positions, directions, params)
    jax.block_until_ready((rgb, density))

    assert rgb.shape == (N, 3) and density.shape == (N, 1)
    assert bool(jnp.all(jnp.isfinite(rgb))) and bool(jnp.all(jnp.isfinite(density)))

    rgb_ref, den_ref = jax.jit(ngp_reference)(positions, directions, params)
    assert bool(jnp.allclose(rgb, rgb_ref, atol=5e-3, rtol=5e-3))
    assert bool(jnp.allclose(density, den_ref, atol=5e-3, rtol=5e-3))
    print("KERNEL_OK")
</pallas_src>

<mosaic_0001>
module attributes {stable_mosaic.version = 11 : i64} {
  func.func @ngp_kernel(%arg0: i32, %arg1: memref<4x512xf32, #tpu.memory_space<vmem>>, %arg2: memref<32x512xbf16, #tpu.memory_space<vmem>>, %arg3: memref<64x32xbf16, #tpu.memory_space<vmem>>, %arg4: memref<16x64xbf16, #tpu.memory_space<vmem>>, %arg5: memref<64x32xbf16, #tpu.memory_space<vmem>>, %arg6: memref<64x64xbf16, #tpu.memory_space<vmem>>, %arg7: memref<3x64xbf16, #tpu.memory_space<vmem>>, %arg8: memref<4x512xf32, #tpu.memory_space<vmem>>, %arg9: memref<32x512xf32, #tpu.memory_space<vmem>>) attributes {dimension_semantics = [#tpu.dimension_semantics<parallel>], iteration_bounds = array<i64: 3>, scalar_prefetch = 0 : i64, scratch_operands = 1 : i64, tpu.core_type = #tpu.core_type<tc>, window_params = [{transform_indices = @transform_0, window_bounds = array<i64: 4, 512>}, {transform_indices = @transform_1, window_bounds = array<i64: 32, 512>}, {pipeline_mode = #tpu.pipeline_mode<synchronous>, transform_indices = @transform_2, window_bounds = array<i64: 64, 32>}, {pipeline_mode = #tpu.pipeline_mode<synchronous>, transform_indices = @transform_3, window_bounds = array<i64: 16, 64>}, {pipeline_mode = #tpu.pipeline_mode<synchronous>, transform_indices = @transform_4, window_bounds = array<i64: 64, 32>}, {pipeline_mode = #tpu.pipeline_mode<synchronous>, transform_indices = @transform_5, window_bounds = array<i64: 64, 64>}, {pipeline_mode = #tpu.pipeline_mode<synchronous>, transform_indices = @transform_6, window_bounds = array<i64: 3, 64>}, {transform_indices = @transform_7, window_bounds = array<i64: 4, 512>}]} {
    %c0 = arith.constant 0 : index
    %c0_0 = arith.constant 0 : index
    %0 = vector.load %arg3[%c0, %c0_0] : memref<64x32xbf16, #tpu.memory_space<vmem>>, vector<64x32xbf16>
    %c0_1 = arith.constant 0 : index
    %c0_2 = arith.constant 0 : index
    %1 = vector.load %arg2[%c0_1, %c0_2] : memref<32x512xbf16, #tpu.memory_space<vmem>>, vector<32x512xbf16>
    %cst = arith.constant dense<0.000000e+00> : vector<64x512xf32>
    %2 = tpu.matmul %0, %1, %cst {dimension_numbers = #tpu.dot_dimension_numbers<[1], [0], [0], [1], [0, 0, 1, 1], [], []>} : vector<64x32xbf16>, vector<32x512xbf16>, vector<64x512xf32> -> vector<64x512xf32>
    %cst_3 = arith.constant 0.000000e+00 : f32
    %3 = vector.broadcast %cst_3 : f32 to vector<64x512xf32>
    %4 = arith.maximumf %2, %3 : vector<64x512xf32>
    %c0_4 = arith.constant 0 : index
    %c0_5 = arith.constant 0 : index
    %5 = vector.load %arg4[%c0_4, %c0_5] : memref<16x64xbf16, #tpu.memory_space<vmem>>, vector<16x64xbf16>
    %6 = arith.truncf %4 : vector<64x512xf32> to vector<64x512xbf16>
    %cst_6 = arith.constant dense<0.000000e+00> : vector<16x512xf32>
    %7 = tpu.matmul %5, %6, %cst_6 {dimension_numbers = #tpu.dot_dimension_numbers<[1], [0], [0], [1], [0, 0, 1, 1], [], []>} : vector<16x64xbf16>, vector<64x512xbf16>, vector<16x512xf32> -> vector<16x512xf32>
    %8 = vector.extract_strided_slice %7 {offsets = [0, 0], sizes = [1, 512], strides = [1, 1]} : vector<16x512xf32> to vector<1x512xf32>
    %cst_7 = arith.constant 1.000000e+00 : f32
    %9 = vector.broadcast %cst_7 : f32 to vector<1x512xf32>
    %10 = arith.subf %8, %9 : vector<1x512xf32>
    %11 = math.exp %10 : vector<1x512xf32>
    %c0_8 = arith.constant 0 : index
    %c0_9 = arith.constant 0 : index
    %12 = vector.load %arg1[%c0_8, %c0_9] : memref<4x512xf32, #tpu.memory_space<vmem>>, vector<1x512xf32>
    %13 = arith.mulf %11, %12 : vector<1x512xf32>
    %c1 = arith.constant 1 : index
    %c0_10 = arith.constant 0 : index
    %14 = vector.load %arg1[%c1, %c0_10] : memref<4x512xf32, #tpu.memory_space<vmem>>, vector<1x512xf32>
    %c2 = arith.constant 2 : index
    %c0_11 = arith.constant 0 : index
    %15 = vector.load %arg1[%c2, %c0_11] : memref<4x512xf32, #tpu.memory_space<vmem>>, vector<1x512xf32>
    %c3 = arith.constant 3 : index
    %c0_12 = arith.constant 0 : index
    %16 = vector.load %arg1[%c3, %c0_12] : memref<4x512xf32, #tpu.memory_space<vmem>>, vector<1x512xf32>
    %17 = arith.mulf %14, %14 : vector<1x512xf32>
    %18 = arith.mulf %15, %15 : vector<1x512xf32>
    %19 = arith.mulf %16, %16 : vector<1x512xf32>
    %20 = arith.mulf %14, %15 : vector<1x512xf32>
    %21 = arith.mulf %15, %16 : vector<1x512xf32>
    %22 = arith.mulf %14, %16 : vector<1x512xf32>
    %cst_13 = arith.constant 0.282094806 : f32
    %23 = vector.broadcast %cst_13 : f32 to vector<1x512xf32>
    %cst_14 = arith.constant -0.488602519 : f32
    %24 = vector.broadcast %cst_14 : f32 to vector<1x512xf32>
    %25 = arith.mulf %24, %15 : vector<1x512xf32>
    %cst_15 = arith.constant 0.488602519 : f32
    %26 = vector.broadcast %cst_15 : f32 to vector<1x512xf32>
    %27 = arith.mulf %26, %16 : vector<1x512xf32>
    %cst_16 = arith.constant -0.488602519 : f32
    %28 = vector.broadcast %cst_16 : f32 to vector<1x512xf32>
    %29 = arith.mulf %28, %14 : vector<1x512xf32>
    %cst_17 = arith.constant 1.09254849 : f32
    %30 = vector.broadcast %cst_17 : f32 to vector<1x512xf32>
    %31 = arith.mulf %30, %20 : vector<1x512xf32>
    %cst_18 = arith.constant -1.09254849 : f32
    %32 = vector.broadcast %cst_18 : f32 to vector<1x512xf32>
    %33 = arith.mulf %32, %21 : vector<1x512xf32>
    %cst_19 = arith.constant 0.946174681 : f32
    %34 = vector.broadcast %cst_19 : f32 to vector<1x512xf32>
    %35 = arith.mulf %34, %19 : vector<1x512xf32>
    %cst_20 = arith.constant 0.31539157 : f32
    %36 = vector.broadcast %cst_20 : f32 to vector<1x512xf32>
    %37 = arith.subf %35, %36 : vector<1x512xf32>
    %cst_21 = arith.constant -1.09254849 : f32
    %38 = vector.broadcast %cst_21 : f32 to vector<1x512xf32>
    %39 = arith.mulf %38, %22 : vector<1x512xf32>
    %40 = arith.subf %17, %18 : vector<1x512xf32>
    %cst_22 = arith.constant 0.546274245 : f32
    %41 = vector.broadcast %cst_22 : f32 to vector<1x512xf32>
    %42 = arith.mulf %41, %40 : vector<1x512xf32>
    %cst_23 = arith.constant 0.590043604 : f32
    %43 = vector.broadcast %cst_23 : f32 to vector<1x512xf32>
    %44 = arith.mulf %43, %15 : vector<1x512xf32>
    %cst_24 = arith.constant -3.000000e+00 : f32
    %45 = vector.broadcast %cst_24 : f32 to vector<1x512xf32>
    %46 = arith.mulf %45, %17 : vector<1x512xf32>
    %47 = arith.addf %46, %18 : vector<1x512xf32>
    %48 = arith.mulf %44, %47 : vector<1x512xf32>
    %cst_25 = arith.constant 2.89061141 : f32
    %49 = vector.broadcast %cst_25 : f32 to vector<1x512xf32>
    %50 = arith.mulf %49, %20 : vector<1x512xf32>
    %51 = arith.mulf %50, %16 : vector<1x512xf32>
    %cst_26 = arith.constant 0.457045794 : f32
    %52 = vector.broadcast %cst_26 : f32 to vector<1x512xf32>
    %53 = arith.mulf %52, %15 : vector<1x512xf32>
    %cst_27 = arith.constant 5.000000e+00 : f32
    %54 = vector.broadcast %cst_27 : f32 to vector<1x512xf32>
    %55 = arith.mulf %54, %19 : vector<1x512xf32>
    %cst_28 = arith.constant 1.000000e+00 : f32
    %56 = vector.broadcast %cst_28 : f32 to vector<1x512xf32>
    %57 = arith.subf %56, %55 : vector<1x512xf32>
    %58 = arith.mulf %53, %57 : vector<1x512xf32>
    %cst_29 = arith.constant 0.373176336 : f32
    %59 = vector.broadcast %cst_29 : f32 to vector<1x512xf32>
    %60 = arith.mulf %59, %16 : vector<1x512xf32>
    %cst_30 = arith.constant 5.000000e+00 : f32
    %61 = vector.broadcast %cst_30 : f32 to vector<1x512xf32>
    %62 = arith.mulf %61, %19 : vector<1x512xf32>
    %cst_31 = arith.constant 3.000000e+00 : f32
    %63 = vector.broadcast %cst_31 : f32 to vector<1x512xf32>
    %64 = arith.subf %62, %63 : vector<1x512xf32>
    %65 = arith.mulf %60, %64 : vector<1x512xf32>
    %cst_32 = arith.constant 0.457045794 : f32
    %66 = vector.broadcast %cst_32 : f32 to vector<1x512xf32>
    %67 = arith.mulf %66, %14 : vector<1x512xf32>
    %cst_33 = arith.constant 5.000000e+00 : f32
    %68 = vector.broadcast %cst_33 : f32 to vector<1x512xf32>
    %69 = arith.mulf %68, %19 : vector<1x512xf32>
    %cst_34 = arith.constant 1.000000e+00 : f32
    %70 = vector.broadcast %cst_34 : f32 to vector<1x512xf32>
    %71 = arith.subf %70, %69 : vector<1x512xf32>
    %72 = arith.mulf %67, %71 : vector<1x512xf32>
    %cst_35 = arith.constant 1.44530571 : f32
    %73 = vector.broadcast %cst_35 : f32 to vector<1x512xf32>
    %74 = arith.mulf %73, %16 : vector<1x512xf32>
    %75 = arith.subf %17, %18 : vector<1x512xf32>
    %76 = arith.mulf %74, %75 : vector<1x512xf32>
    %cst_36 = arith.constant 0.590043604 : f32
    %77 = vector.broadcast %cst_36 : f32 to vector<1x512xf32>
    %78 = arith.mulf %77, %14 : vector<1x512xf32>
    %cst_37 = arith.constant 0.000000e+00 : f32
    %79 = vector.broadcast %cst_37 : f32 to vector<1x512xf32>
    %80 = arith.subf %79, %17 : vector<1x512xf32>
    %cst_38 = arith.constant 3.000000e+00 : f32
    %81 = vector.broadcast %cst_38 : f32 to vector<1x512xf32>
    %82 = arith.mulf %81, %18 : vector<1x512xf32>
    %83 = arith.addf %80, %82 : vector<1x512xf32>
    %84 = arith.mulf %78, %83 : vector<1x512xf32>
    %c0_39 = arith.constant 0 : index
    %c0_40 = arith.constant 0 : index
    %85 = vector.load %arg9[%c0_39, %c0_40] : memref<32x512xf32, #tpu.memory_space<vmem>>, vector<1x512xf32>
    tpu.vector_store %arg9[%c0_39, %c0_40], %23 {strides = array<i32>} : memref<32x512xf32, #tpu.memory_space<vmem>>, vector<1x512xf32>,
    %c1_41 = arith.constant 1 : index
    %c0_42 = arith.constant 0 : index
    %86 = vector.load %arg9[%c1_41, %c0_42] : memref<32x512xf32, #tpu.memory_space<vmem>>, vector<1x512xf32>
    tpu.vector_store %arg9[%c1_41, %c0_42], %25 {strides = array<i32>} : memref<32x512xf32, #tpu.memory_space<vmem>>, vector<1x512xf32>,
    %c2_43 = arith.constant 2 : index
    %c0_44 = arith.constant 0 : index
    %87 = vector.load %arg9[%c2_43, %c0_44] : memref<32x512xf32, #tpu.memory_space<vmem>>, vector<1x512xf32>
    tpu.vector_store %arg9[%c2_43, %c0_44], %27 {strides = array<i32>} : memref<32x512xf32, #tpu.memory_space<vmem>>, vector<1x512xf32>,
    %c3_45 = arith.constant 3 : index
    %c0_46 = arith.constant 0 : index
    %88 = vector.load %arg9[%c3_45, %c0_46] : memref<32x512xf32, #tpu.memory_space<vmem>>, vector<1x512xf32>
    tpu.vector_store %arg9[%c3_45, %c0_46], %29 {strides = array<i32>} : memref<32x512xf32, #tpu.memory_space<vmem>>, vector<1x512xf32>,
    %c4 = arith.constant 4 : index
    %c0_47 = arith.constant 0 : index
    %89 = vector.load %arg9[%c4, %c0_47] : memref<32x512xf32, #tpu.memory_space<vmem>>, vector<1x512xf32>
    tpu.vector_store %arg9[%c4, %c0_47], %31 {strides = array<i32>} : memref<32x512xf32, #tpu.memory_space<vmem>>, vector<1x512xf32>,
    %c5 = arith.constant 5 : index
    %c0_48 = arith.constant 0 : index
    %90 = vector.load %arg9[%c5, %c0_48] : memref<32x512xf32, #tpu.memory_space<vmem>>, vector<1x512xf32>
    tpu.vector_store %arg9[%c5, %c0_48], %33 {strides = array<i32>} : memref<32x512xf32, #tpu.memory_space<vmem>>, vector<1x512xf32>,
    %c6 = arith.constant 6 : index
    %c0_49 = arith.constant 0 : index
    %91 = vector.load %arg9[%c6, %c0_49] : memref<32x512xf32, #tpu.memory_space<vmem>>, vector<1x512xf32>
    tpu.vector_store %arg9[%c6, %c0_49], %37 {strides = array<i32>} : memref<32x512xf32, #tpu.memory_space<vmem>>, vector<1x512xf32>,
    %c7 = arith.constant 7 : index
    %c0_50 = arith.constant 0 : index
    %92 = vector.load %arg9[%c7, %c0_50] : memref<32x512xf32, #tpu.memory_space<vmem>>, vector<1x512xf32>
    tpu.vector_store %arg9[%c7, %c0_50], %39 {strides = array<i32>} : memref<32x512xf32, #tpu.memory_space<vmem>>, vector<1x512xf32>,
    %c8 = arith.constant 8 : index
    %c0_51 = arith.constant 0 : index
    %93 = vector.load %arg9[%c8, %c0_51] : memref<32x512xf32, #tpu.memory_space<vmem>>, vector<1x512xf32>
    tpu.vector_store %arg9[%c8, %c0_51], %42 {strides = array<i32>} : memref<32x512xf32, #tpu.memory_space<vmem>>, vector<1x512xf32>,
    %c9 = arith.constant 9 : index
    %c0_52 = arith.constant 0 : index
    %94 = vector.load %arg9[%c9, %c0_52] : memref<32x512xf32, #tpu.memory_space<vmem>>, vector<1x512xf32>
    tpu.vector_store %arg9[%c9, %c0_52], %48 {strides = array<i32>} : memref<32x512xf32, #tpu.memory_space<vmem>>, vector<1x512xf32>,
    %c10 = arith.constant 10 : index
    %c0_53 = arith.constant 0 : index
    %95 = vector.load %arg9[%c10, %c0_53] : memref<32x512xf32, #tpu.memory_space<vmem>>, vector<1x512xf32>
    tpu.vector_store %arg9[%c10, %c0_53], %51 {strides = array<i32>} : memref<32x512xf32, #tpu.memory_space<vmem>>, vector<1x512xf32>,
    %c11 = arith.constant 11 : index
    %c0_54 = arith.constant 0 : index
    %96 = vector.load %arg9[%c11, %c0_54] : memref<32x512xf32, #tpu.memory_space<vmem>>, vector<1x512xf32>
    tpu.vector_store %arg9[%c11, %c0_54], %58 {strides = array<i32>} : memref<32x512xf32, #tpu.memory_space<vmem>>, vector<1x512xf32>,
    %c12 = arith.constant 12 : index
    %c0_55 = arith.constant 0 : index
    %97 = vector.load %arg9[%c12, %c0_55] : memref<32x512xf32, #tpu.memory_space<vmem>>, vector<1x512xf32>
    tpu.vector_store %arg9[%c12, %c0_55], %65 {strides = array<i32>} : memref<32x512xf32, #tpu.memory_space<vmem>>, vector<1x512xf32>,
    %c13 = arith.constant 13 : index
    %c0_56 = arith.constant 0 : index
    %98 = vector.load %arg9[%c13, %c0_56] : memref<32x512xf32, #tpu.memory_space<vmem>>, vector<1x512xf32>
    tpu.vector_store %arg9[%c13, %c0_56], %72 {strides = array<i32>} : memref<32x512xf32, #tpu.memory_space<vmem>>, vector<1x512xf32>,
    %c14 = arith.constant 14 : index
    %c0_57 = arith.constant 0 : index
    %99 = vector.load %arg9[%c14, %c0_57] : memref<32x512xf32, #tpu.memory_space<vmem>>, vector<1x512xf32>
    tpu.vector_store %arg9[%c14, %c0_57], %76 {strides = array<i32>} : memref<32x512xf32, #tpu.memory_space<vmem>>, vector<1x512xf32>,
    %c15 = arith.constant 15 : index
    %c0_58 = arith.constant 0 : index
    %100 = vector.load %arg9[%c15, %c0_58] : memref<32x512xf32, #tpu.memory_space<vmem>>, vector<1x512xf32>
    tpu.vector_store %arg9[%c15, %c0_58], %84 {strides = array<i32>} : memref<32x512xf32, #tpu.memory_space<vmem>>, vector<1x512xf32>,
    %c16 = arith.constant 16 : index
    %c0_59 = arith.constant 0 : index
    %101 = vector.load %arg9[%c16, %c0_59] : memref<32x512xf32, #tpu.memory_space<vmem>>, vector<16x512xf32>
    tpu.vector_store %arg9[%c16, %c0_59], %7 {strides = array<i32>} : memref<32x512xf32, #tpu.memory_space<vmem>>, vector<16x512xf32>,
    %c0_60 = arith.constant 0 : index
    %c0_61 = arith.constant 0 : index
    %102 = vector.load %arg5[%c0_60, %c0_61] : memref<64x32xbf16, #tpu.memory_space<vmem>>, vector<64x32xbf16>
    %c0_62 = arith.constant 0 : index
    %c0_63 = arith.constant 0 : index
    %103 = vector.load %arg9[%c0_62, %c0_63] : memref<32x512xf32, #tpu.memory_space<vmem>>, vector<32x512xf32>
    %104 = arith.truncf %103 : vector<32x512xf32> to vector<32x512xbf16>
    %cst_64 = arith.constant dense<0.000000e+00> : vector<64x512xf32>
    %105 = tpu.matmul %102, %104, %cst_64 {dimension_numbers = #tpu.dot_dimension_numbers<[1], [0], [0], [1], [0, 0, 1, 1], [], []>} : vector<64x32xbf16>, vector<32x512xbf16>, vector<64x512xf32> -> vector<64x512xf32>
    %cst_65 = arith.constant 0.000000e+00 : f32
    %106 = vector.broadcast %cst_65 : f32 to vector<64x512xf32>
    %107 = arith.maximumf %105, %106 : vector<64x512xf32>
    %c0_66 = arith.constant 0 : index
    %c0_67 = arith.constant 0 : index
    %108 = vector.load %arg6[%c0_66, %c0_67] : memref<64x64xbf16, #tpu.memory_space<vmem>>, vector<64x64xbf16>
    %109 = arith.truncf %107 : vector<64x512xf32> to vector<64x512xbf16>
    %cst_68 = arith.constant dense<0.000000e+00> : vector<64x512xf32>
    %110 = tpu.matmul %108, %109, %cst_68 {dimension_numbers = #tpu.dot_dimension_numbers<[1], [0], [0], [1], [0, 0, 1, 1], [], []>} : vector<64x64xbf16>, vector<64x512xbf16>, vector<64x512xf32> -> vector<64x512xf32>
    %cst_69 = arith.constant 0.000000e+00 : f32
    %111 = vector.broadcast %cst_69 : f32 to vector<64x512xf32>
    %112 = arith.maximumf %110, %111 : vector<64x512xf32>
    %c0_70 = arith.constant 0 : index
    %c0_71 = arith.constant 0 : index
    %113 = vector.load %arg7[%c0_70, %c0_71] : memref<3x64xbf16, #tpu.memory_space<vmem>>, vector<3x64xbf16>
    %114 = arith.truncf %112 : vector<64x512xf32> to vector<64x512xbf16>
    %cst_72 = arith.constant dense<0.000000e+00> : vector<3x512xf32>
    %115 = tpu.matmul %113, %114, %cst_72 {dimension_numbers = #tpu.dot_dimension_numbers<[1], [0], [0], [1], [0, 0, 1, 1], [], []>} : vector<3x64xbf16>, vector<64x512xbf16>, vector<3x512xf32> -> vector<3x512xf32>
    %116 = arith.negf %115 : vector<3x512xf32>
    %117 = math.exp %116 : vector<3x512xf32>
    %cst_73 = arith.constant 1.000000e+00 : f32
    %118 = vector.broadcast %cst_73 : f32 to vector<3x512xf32>
    %119 = arith.addf %118, %117 : vector<3x512xf32>
    %120 = arith.divf %118, %119 : vector<3x512xf32>
    %c0_74 = arith.constant 0 : index
    %c0_75 = arith.constant 0 : index
    %121 = vector.load %arg8[%c0_74, %c0_75] : memref<4x512xf32, #tpu.memory_space<vmem>>, vector<1x512xf32>
    tpu.vector_store %arg8[%c0_74, %c0_75], %13 {strides = array<i32>} : memref<4x512xf32, #tpu.memory_space<vmem>>, vector<1x512xf32>,
    %c1_76 = arith.constant 1 : index
    %c0_77 = arith.constant 0 : index
    %122 = vector.load %arg8[%c1_76, %c0_77] : memref<4x512xf32, #tpu.memory_space<vmem>>, vector<3x512xf32>
    tpu.vector_store %arg8[%c1_76, %c0_77], %120 {strides = array<i32>} : memref<4x512xf32, #tpu.memory_space<vmem>>, vector<3x512xf32>,
    return
  }
  func.func @transform_0(%arg0: i32) -> (i32, i32) {
    %c0_i32 = arith.constant 0 : i32
    %c0_i32_0 = arith.constant 0 : i32
    return %c0_i32, %arg0 : i32, i32
  }
  func.func @transform_1(%arg0: i32) -> (i32, i32) {
    %c0_i32 = arith.constant 0 : i32
    %c0_i32_0 = arith.constant 0 : i32
    return %c0_i32, %arg0 : i32, i32
  }
  func.func @transform_2(%arg0: i32) -> (i32, i32) {
    %c0_i32 = arith.constant 0 : i32
    %c0_i32_0 = arith.constant 0 : i32
    %c0_i32_1 = arith.constant 0 : i32
    return %c0_i32, %c0_i32_0 : i32, i32
  }
  func.func @transform_3(%arg0: i32) -> (i32, i32) {
    %c0_i32 = arith.constant 0 : i32
    %c0_i32_0 = arith.constant 0 : i32
    %c0_i32_1 = arith.constant 0 : i32
    return %c0_i32, %c0_i32_0 : i32, i32
  }
  func.func @transform_4(%arg0: i32) -> (i32, i32) {
    %c0_i32 = arith.constant 0 : i32
    %c0_i32_0 = arith.constant 0 : i32
    %c0_i32_1 = arith.constant 0 : i32
    return %c0_i32, %c0_i32_0 : i32, i32
  }
  func.func @transform_5(%arg0: i32) -> (i32, i32) {
    %c0_i32 = arith.constant 0 : i32
    %c0_i32_0 = arith.constant 0 : i32
    %c0_i32_1 = arith.constant 0 : i32
    return %c0_i32, %c0_i32_0 : i32, i32
  }
  func.func @transform_6(%arg0: i32) -> (i32, i32) {
    %c0_i32 = arith.constant 0 : i32
    %c0_i32_0 = arith.constant 0 : i32
    %c0_i32_1 = arith.constant 0 : i32
    return %c0_i32, %c0_i32_0 : i32, i32
  }
  func.func @transform_7(%arg0: i32) -> (i32, i32) {
    %c0_i32 = arith.constant 0 : i32
    %c0_i32_0 = arith.constant 0 : i32
    return %c0_i32, %arg0 : i32, i32
  }
}

</mosaic_0001>

<bundles_post_ra>
// kernel: ngp_forward.1
= control target key start
LH: loop header
LB: loop body
LE: loop exit
PB: predicated region body
PF: predicated region fallthrough
CT: control target
= control target key end

     0   :  { %s1798_s24 = smov 0   ;;  %s1800_s25 = smov 0   ;;  %s2128_s0 = inlined_call_operand.vmem [shape: f32[4,1536], index: 0, kind: input, shape index: {}]   ;;  %s2129_s1 = inlined_call_operand.vmem [shape: bf16[32,1536], index: 1, kind: input, shape index: {}]   ;;  %s2130_s2 = inlined_call_operand.vmem [shape: bf16[64,32], index: 2, kind: input, shape index: {}]   ;;  %s2131_s3 = inlined_call_operand.vmem [shape: bf16[16,64], index: 3, kind: input, shape index: {}]   ;;  %s2132_s4 = inlined_call_operand.vmem [shape: bf16[64,32], index: 4, kind: input, shape index: {}]   ;;  %s2133_s5 = inlined_call_operand.vmem [shape: bf16[64,64], index: 5, kind: input, shape index: {}]   ;;  %s2134_s6 = inlined_call_operand.vmem [shape: bf16[3,64], index: 6, kind: input, shape index: {}]   ;;  %s2135_s7 = inlined_call_operand.vmem [shape: f32[4,1536], index: 7, kind: output, shape index: {}]  }
   0x1   :  { %s1802_s26 = smov 0  }
   0x2 LB: > { %s1577_s27 = sadd.s32 4294967295, %s1753_s26   ;;  %s1815_s28 = sadd.s32 1, %s1753_s26   ;;  %s1753_s26 = sphi %s1802_s26, %s2140_s26   ;;  %s1749_s25 = sphi %s1800_s25, %s2139_s25   ;;  %s1745_s24 = sphi %s1798_s24, %s2138_s24  }
   0x3   : > { %s47_s29 = ssub.s32 %s1753_s26, %s1815_s28  ;;  %s50_s30 = sadd.s32 1, %s1749_s25 }
   0x4   : > { %p48_p0 = scmp.eq.s32.totalorder %s47_s29, 0  ;;  %p57_p1 = scmp.ne.s32.totalorder %s1749_s25, %s1745_s24 }
   0x5   : > { %p58_p2 = scmp.eq.s32.totalorder %s1753_s26, 0  ;;  %p1580_p4 = scmp.ge.s32.totalorder %s1753_s26, 3 }
   0x6   : > { %s1824_s8 = scalar_select %p48_p0, %s1749_s25, %s50_s30  }
   0x7   : > { %p59_p3 = por %p58_p2, %p57_p1  ;;  %229 = sbr.rel (%p1580_p4) target bundleno = 20 (0x14), region = 36 }
   0xc   : > { %241 = sbr.rel (!%p59_p3) target bundleno = 20 (0x14), region = 44  ;;  %s243_s9 = sand.u32 (%p59_p3), 1, %s1749_s25  }
   0xd   : > { %s1654_s10 = sshll.u32 (%p59_p3), %s1753_s26, 4  ;;  %s1581_s11 = sshll.u32 (%p59_p3), %s243_s9, 6 }
   0xe   : > { %s248_s14 = scalar_lea.vmem (%p59_p3), %s2129_s1, %s1654_s10  ;;  %s245_s15 = scalar_lea.vmem (%p59_p3), [#allocation3], %s1581_s11 }
   0xf   : > { %v261_v0 = vld [vmem:[%s248_s14] sm:$0xff] (%p59_p3)  ;;  %v263_v1 = vld [vmem:[%s248_s14 + $0x8] sm:$0xff] (%p59_p3)  ;;  %v265_v2 = vld [vmem:[%s248_s14 + $0x30] sm:$0xff] (%p59_p3) }
  0x10   : > { %262 = vst [vmem:[%s245_s15] sm:$0xff] (%p59_p3), %v261_v0  ;;  %264 = vst [vmem:[%s245_s15 + $0x8] sm:$0xff] (%p59_p3), %v263_v1  ;;  %v267_v3 = vld [vmem:[%s248_s14 + $0x38] sm:$0xff] (%p59_p3)  ;;  %v269_v4 = vld [vmem:[%s248_s14 + $0x60] sm:$0xff] (%p59_p3) }
  0x11   : > { %266 = vst [vmem:[%s245_s15 + $0x10] sm:$0xff] %v265_v2  ;;  %v271_v5 = vld [vmem:[%s248_s14 + $0x68] sm:$0xff]  ;;  %268 = vst [vmem:[%s245_s15 + $0x18] sm:$0xff] %v267_v3  ;;  %v273_v6 = vld [vmem:[%s248_s14 + $0x90] sm:$0xff] }
  0x12   : > { %270 = vst [vmem:[%s245_s15 + $0x20] sm:$0xff] %v269_v4  ;;  %272 = vst [vmem:[%s245_s15 + $0x28] sm:$0xff] %v271_v5  ;;  %v275_v7 = vld [vmem:[%s248_s14 + $0x98] sm:$0xff] }
  0x13   : > { %274 = vst [vmem:[%s245_s15 + $0x30] sm:$0xff] %v273_v6  ;;  %276 = vst [vmem:[%s245_s15 + $0x38] sm:$0xff] %v275_v7 }
  0x14 PF: > { %p1584_p5 = scmp.ge.s32.totalorder %s1753_s26, 1  ;;  %p281_p6 = scmp.lt.s32.totalorder %s1753_s26, 4 }
  0x16   : > { %p282_p7 = pnand %p1584_p5, %p281_p6 }
  0x17   : > { %s288_s16 = sand.u32 (!%p282_p7), 1, %s1745_s24   ;;  %s1586_s11 = sshll.u32 (!%p282_p7), %s1577_s27, 2 }
  0x18   : > { %285 = sbr.rel (%p282_p7) target bundleno = 1210 (0x4ba), region = 67  ;;  %s1585_s17 = sshll.u32 (!%p282_p7), %s288_s16, 6 }
  0x19   : > { %s290_s18 = scalar_lea.vmem (!%p282_p7), [#allocation3], %s1585_s17  ;;  %p325_p8 = scmp.lt.s32.totalorder (!%p282_p7), %s1586_s11, 11 }
  0x1d   : > { %v1755_v8 = vmov 0   ;;  %v1682_v9 = vld [vmem:[%s290_s18 + $0x24] ss:$16 sps:$4 sm:$0xff]   ;;  %v1684_v10 = vld [vmem:[%s290_s18 + $0x2c] ss:$16 sps:$4 sm:$0xff]   ;;  %vm414_vm0 = vcmask 261120  }
  0x1e   : > { %459 = vmatprep.mubr.bf16.mxu0 %v1755_v8  ;;  %532 = vmatprep.mubr.bf16.mxu1 %v1755_v8  ;;  %v1686_v11 = vld [vmem:[%s290_s18 + $0x20] ss:$16 sps:$4 sm:$0xff]   ;;  %v1687_v12 = vld [vmem:[%s290_s18 + $0x28] ss:$16 sps:$4 sm:$0xff]   ;;  %v1688_v13 = vld [vmem:[%s290_s18 + $0x4] ss:$16 sps:$4 sm:$0xff]  }
  0x1f   : > { %439 = vmatprep.subr.bf16.mxu0 %v1682_v9  ;;  %512 = vmatprep.subr.bf16.mxu1 %v1684_v10  ;;  %v1690_v14 = vld [vmem:[%s290_s18 + $0xc] ss:$16 sps:$4 sm:$0xff]   ;;  %v1692_v15 = vld [vmem:[%s290_s18] ss:$16 sps:$4 sm:$0xff]   ;;  %v1693_v16 = vld [vmem:[%s290_s18 + $0x8] ss:$16 sps:$4 sm:$0xff]  }
  0x20   : > { %440 = vmatpush1.bf16.msra.mxu0 %v1686_v11  ;;  %513 = vmatpush1.bf16.msra.mxu1 %v1687_v12  ;;  %v1694_v17 = vld [vmem:[%s2130_s2] sm:$0xff]   ;;  %v1695_v18 = vld [vmem:[%s2130_s2 + $0x8] sm:$0xff]   ;;  %v1696_v19 = vld [vmem:[%s2130_s2 + $0x10] sm:$0xff]   ;;  %vm628_vm1 = vcmask 523264   ;;  %s2142_s11 = smov (!%p325_p8, %s1586_s11), 11 }
  0x21   : > { %441 = vmatprep.subr.bf16.mxu0 %v1688_v13  ;;  %514 = vmatprep.subr.bf16.mxu1 %v1690_v14  ;;  %v1697_v20 = vld [vmem:[%s2130_s2 + $0x18] sm:$0xff]   ;;  %s1587_s12 = sshll.u32 %s2142_s11, 2 }
  0x22   : > { %s1918_s15 = scalar_lea.vmem %s2128_s0, %s1587_s12  ;;  %s1995_s22 = scalar_lea.vmem %s2135_s7, %s1587_s12 }
  0x24   : > { %442 = vmatpush1.bf16.msra.mxu0 %v1692_v15  ;;  %515 = vmatpush1.bf16.msra.mxu1 %v1693_v16 }
  0x27   : > { %1602 = vmatmul.mubr.msk.bf16.vlgmr.msra.gmra.mxu0 %vm414_vm0, %v1694_v17  ;;  %1606 = vmatmul.mubr.msk.bf16.vlgmr.msra.gmra.mxu1 %vm414_vm0, %v1694_v17 }
  0x28   : > { %469 = vmatprep.mubr.bf16.mxu0 %v1755_v8  ;;  %542 = vmatprep.mubr.bf16.mxu1 %v1755_v8 }
  0x2f   : > { %1603 = vmatmul.mubr.msk.bf16.gmra.mxu0 %vm414_vm0, %v1695_v18  ;;  %1607 = vmatmul.mubr.msk.bf16.gmra.mxu1 %vm414_vm0, %v1695_v18 }
  0x30   : > { %479 = vmatprep.mubr.bf16.mxu0 %v1755_v8  ;;  %552 = vmatprep.mubr.bf16.mxu1 %v1755_v8 }
  0x37   : > { %1604 = vmatmul.mubr.msk.bf16.gmra.mxu0 %vm414_vm0, %v1696_v19  ;;  %1608 = vmatmul.mubr.msk.bf16.gmra.mxu1 %vm414_vm0, %v1696_v19 }
  0x38   : > { %489 = vmatprep.mubr.bf16.mxu0 %v1755_v8  ;;  %562 = vmatprep.mubr.bf16.mxu1 %v1755_v8 }
  0x3f   : > { %1605 = vmatmul.mubr.msk.bf16.gmra.mxu0 %vm414_vm0, %v1697_v20  ;;  %1609 = vmatmul.mubr.msk.bf16.gmra.mxu1 %vm414_vm0, %v1697_v20 }
  0x40   : > { %664 = vmatprep.mubr.bf16.mxu0 %v1755_v8  ;;  %707 = vmatprep.mubr.bf16.mxu1 %v1755_v8 }
  0xe7   : > { %v1865_v21 = vpop.f32.mrf.mxu0  ;;  %v1867_v22 = vpop.f32.mrf.mxu1 }
  0xe9   : > { %v1869_v23 = vpop.f32.mrf.mxu0  ;;  %v1871_v24 = vpop.f32.mrf.mxu1 }
  0xeb   : > { %v1873_v25 = vpop.f32.mrf.mxu0  ;;  %v1875_v26 = vpop.f32.mrf.mxu1 }
  0xed   : > { %v1877_v27 = vpop.f32.mrf.mxu0  ;;  %v1879_v28 = vpop.f32.mrf.mxu1 }
  0xee   : > { %v578_v20 = vmax.f32 %v1877_v27, 0.0  ;;  %v579_v27 = vmax.f32 %v1875_v26, 0.0  ;;  %v1619_v26 = vld [vmem:[%s1918_s15 + $0x3] ss:$4 sm:$0xf] }
  0xef   : > { %v1881_v29 = vpop.f32.mrf.mxu0  ;;  %v1883_v30 = vpop.f32.mrf.mxu1 }
  0xf1   : > { %v473_v31 = vpop.f32.mrf.mxu0  ;;  %v546_v32 = vpop.f32.mrf.mxu1 }
  0xf2   : > { %v582_v14 = vmax.f32 %v473_v31, 0.0  ;;  %v584_v15 = vmax.f32 %v546_v32, 0.0  ;;  %v574_v31 = vmax.f32 %v1869_v23, 0.0  ;;  %v576_v32 = vmax.f32 %v1871_v24, 0.0 }
  0xf3   : > { %v1885_v33 = vpop.f32.mrf.mxu0  ;;  %v1887_v34 = vpop.f32.mrf.mxu1 }
  0xf4   : > { %v585_v16 = vmax.f32 %v1885_v33, 0.0  ;;  %v587_v17 = vmax.f32 %v1887_v34, 0.0  ;;  %v577_v33 = vmax.f32 %v1873_v25, 0.0  ;;  %v1698_v25 = vld [vmem:[%s2131_s3] sm:$0xff]  }
  0xf5   : > { %v477_v35 = vpop.f32.mrf.mxu0  ;;  %v550_v36 = vpop.f32.mrf.mxu1 }
  0xf6   : > { %v586_v7 = vmax.f32 %v477_v35, 0.0  ;;  %v588_v9 = vmax.f32 %v550_v36, 0.0  ;;  %v580_v35 = vmax.f32 %v1879_v28, 0.0 }
  0xf7   : > { %v481_v37 = vpop.f32.mrf.mxu0  ;;  %v554_v38 = vpop.f32.mrf.mxu1 }
  0xf8   : > { %v589_v12 = vmax.f32 %v481_v37, 0.0  ;;  %v591_v13 = vmax.f32 %v554_v38, 0.0  ;;  %v612_v36 = vpack.c.bf16 %v586_v7, %v582_v14  ;;  %v581_v37 = vmax.f32 %v1881_v29, 0.0 }
  0xf9   : > { %v483_v39 = vpop.f32.mrf.mxu0  ;;  %v556_v40 = vpop.f32.mrf.mxu1  ;;  %v583_v38 = vmax.f32 %v1883_v30, 0.0  ;;  %v573_v29 = vmax.f32 %v1865_v21, 0.0  ;;  %v575_v30 = vmax.f32 %v1867_v22, 0.0  ;;  %v1617_v21 = vld [vmem:[%s1918_s15 + $0x1] ss:$4 sm:$0xf] }
  0xfa   : > { %v590_v63 = vmax.f32 %v483_v39, 0.0  ;;  %v592_v0 = vmax.f32 %v556_v40, 0.0  ;;  %v614_v39 = vpack.c.bf16 %v588_v9, %v584_v15  ;;  %v611_v34 = vpack.c.bf16 %v585_v16, %v581_v37  ;;  %v1618_v22 = vld [vmem:[%s1918_s15 + $0x2] ss:$4 sm:$0xf] }
  0xfb   : > { %v485_v41 = vpop.f32.mrf.mxu0  ;;  %v558_v42 = vpop.f32.mrf.mxu1  ;;  %v613_v28 = vpack.c.bf16 %v587_v17, %v583_v38  ;;  %v608_v40 = vpack.c.bf16 %v578_v20, %v574_v31  ;;  %v607_v23 = vpack.c.bf16 %v577_v33, %v573_v29  ;;  %v609_v24 = vpack.c.bf16 %v579_v27, %v575_v30 }
  0xfc   : > { %v593_v3 = vmax.f32 %v485_v41, 0.0  ;;  %v595_v4 = vmax.f32 %v558_v42, 0.0  ;;  %v610_v41 = vpack.c.bf16 %v580_v35, %v576_v32  ;;  %v762_v42 = vmul.f32 %v1617_v21, %v1617_v21 }
  0xfd   : > { %v487_v43 = vpop.f32.mrf.mxu0  ;;  %v560_v44 = vpop.f32.mrf.mxu1  ;;  %v793_v16 = vmul.f32 1.4453057, %v1619_v26 }
  0xfe   : > { %v594_v51 = vmax.f32 %v487_v43, 0.0  ;;  %v596_v52 = vmax.f32 %v560_v44, 0.0  ;;  %v615_v18 = vpack.c.bf16 %v593_v3, %v589_v12  ;;  %v617_v19 = vpack.c.bf16 %v595_v4, %v591_v13 }
  0xff   : > { %v491_v45 = vpop.f32.mrf.mxu0  ;;  %v564_v46 = vpop.f32.mrf.mxu1  ;;  %v763_v43 = vmul.f32 %v1618_v22, %v1618_v22  ;;  %v764_v44 = vmul.f32 %v1619_v26, %v1619_v26  ;;  %v788_v13 = vmul.f32 0.37317634, %v1619_v26 }
 0x100   : > { %v597_v61 = vmax.f32 %v491_v45, 0.0  ;;  %v599_v62 = vmax.f32 %v564_v46, 0.0  ;;  %v616_v10 = vpack.c.bf16 %v594_v51, %v590_v63  ;;  %v618_v11 = vpack.c.bf16 %v596_v52, %v592_v0 }
 0x101   : > { %v493_v47 = vpop.f32.mrf.mxu0  ;;  %v566_v48 = vpop.f32.mrf.mxu1  ;;  %v765_v45 = vmul.f32 %v1618_v22, %v1617_v21  ;;  %v779_v46 = vmul.f32 -3.0, %v762_v42  ;;  %v784_v51 = vmul.f32 0.4570458, %v1618_v22  ;;  %v791_v52 = vmul.f32 0.4570458, %v1617_v21 }
 0x102   : > { %v598_v57 = vmax.f32 %v493_v47, 0.0  ;;  %v600_v58 = vmax.f32 %v566_v48, 0.0  ;;  %v785_v47 = vmul.f32 5.0, %v764_v44  ;;  %v796_v48 = vsub.f32 0.0, %v762_v42 }
 0x103   : > { %v495_v49 = vpop.f32.mrf.mxu0  ;;  %v568_v50 = vpop.f32.mrf.mxu1  ;;  %v769_v63 = vmul.f32 0.48860252, %v1619_v26 }
 0x104   : > { %v601_v53 = vmax.f32 %v495_v49, 0.0  ;;  %v603_v54 = vmax.f32 %v568_v50, 0.0  ;;  %v797_v49 = vmul.f32 3.0, %v763_v43  ;;  %v778_v50 = vmul.f32 0.5900436, %v1618_v22 }
 0x105   : > { %v497_v55 = vpop.f32.mrf.mxu0  ;;  %v570_v56 = vpop.f32.mrf.mxu1  ;;  %v786_v0 = vsub.f32 1.0, %v785_v47  ;;  %v1621_v15 = vadd.f32 -3.0, %v785_v47 }
 0x106   : > { %v602_v59 = vmax.f32 %v497_v55, 0.0  ;;  %v604_v60 = vmax.f32 %v570_v56, 0.0  ;;  %v619_v5 = vpack.c.bf16 %v601_v53, %v597_v61  ;;  %v621_v6 = vpack.c.bf16 %v603_v54, %v599_v62 }
 0x107   : > { %v732_v53 = vlaneseq  ;;  %v795_v54 = vmul.f32 0.5900436, %v1617_v21  ;;  %v766_v55 = vmul.f32 %v1619_v26, %v1618_v22  ;;  %v767_v56 = vmul.f32 %v1619_v26, %v1617_v21 }
 0x108   : > { %v620_v1 = vpack.c.bf16 %v602_v59, %v598_v57  ;;  %v622_v2 = vpack.c.bf16 %v604_v60, %v600_v58  ;;  %v773_v57 = vmul.f32 0.9461747, %v764_v44  ;;  %v776_v58 = vsub.f32 %v762_v42, %v763_v43 }
 0x109   : > { %v780_v59 = vadd.f32 %v779_v46, %v763_v43  ;;  %v782_v60 = vmul.f32 2.8906114, %v765_v45  ;;  %vm1923_vm2 = vcmp.lt.s32.totalorder %v732_v53, 512  ;;  %v768_v62 = vmul.f32 -0.48860252, %v1618_v22 }
 0x10a   : > { %640 = vmatprep.subr.bf16.mxu0 %v620_v1  ;;  %683 = vmatprep.subr.bf16.mxu1 %v622_v2  ;;  %v770_v1 = vmul.f32 -0.48860252, %v1617_v21  ;;  %v771_v2 = vmul.f32 1.0925485, %v765_v45  ;;  %v772_v3 = vmul.f32 -1.0925485, %v766_v55  ;;  %v787_v12 = vmul.f32 %v786_v0, %v784_v51 }
 0x10b   : > { %641 = vmatpush1.bf16.msra.mxu0 %v619_v5  ;;  %684 = vmatpush1.bf16.msra.mxu1 %v621_v6  ;;  %v781_v4 = vmul.f32 %v780_v59, %v778_v50  ;;  %v1620_v5 = vadd.f32 -0.31539157, %v773_v57  ;;  %v775_v6 = vmul.f32 -1.0925485, %v767_v56  ;;  %v777_v7 = vmul.f32 0.54627424, %v776_v58 }
 0x10c   : > { %642 = vmatprep.subr.bf16.mxu0 %v616_v10  ;;  %685 = vmatprep.subr.bf16.mxu1 %v618_v11  ;;  %v783_v9 = vmul.f32 %v1619_v26, %v782_v60  ;;  %807 = vst.msk [vmem:[#allocation2 + $0x1] ss:$8 sm:$0xf] %vm1923_vm2, %v768_v62  ;;  %810 = vst.msk [vmem:[#allocation2 + $0x2] ss:$8 sm:$0xf] %vm1923_vm2, %v769_v63  ;;  %v792_v14 = vmul.f32 %v791_v52, %v786_v0 }
 0x10d   : > { %v730_v10 = vld [vmem:[%s1918_s15] ss:$4 sm:$0xf]  ;;  %v1932_v11 = vshrl.u32 %v732_v53, 7  ;;  %v798_v17 = vadd.f32 %v797_v49, %v796_v48  ;;  %v790_v20 = vmul.f32 %v1621_v15, %v788_v13  ;;  %v794_v35 = vmul.f32 %v793_v16, %v776_v58 }
 0x10e   : > { %813 = vst.msk [vmem:[#allocation2 + $0x3] ss:$8 sm:$0xf] %vm1923_vm2, %v770_v1  ;;  %816 = vst.msk [vmem:[#allocation2 + $0x4] ss:$8 sm:$0xf] %vm1923_vm2, %v771_v2 }
 0x10f   : > { %643 = vmatpush1.bf16.msra.mxu0 %v615_v18  ;;  %686 = vmatpush1.bf16.msra.mxu1 %v617_v19  ;;  %819 = vst.msk [vmem:[#allocation2 + $0x5] ss:$8 sm:$0xf] %vm1923_vm2, %v772_v3  ;;  %831 = vst.msk [vmem:[#allocation2 + $0x21] ss:$8 sm:$0xf] %vm1923_vm2, %v781_v4 }
 0x110   : > { %644 = vmatprep.subr.bf16.mxu0 %v612_v36  ;;  %687 = vmatprep.subr.bf16.mxu1 %v614_v39  ;;  %822 = vst.msk [vmem:[#allocation2 + $0x6] ss:$8 sm:$0xf] %vm1923_vm2, %v1620_v5  ;;  %825 = vst.msk [vmem:[#allocation2 + $0x7] ss:$8 sm:$0xf] %vm1923_vm2, %v775_v6  ;;  %v799_v36 = vmul.f32 %v798_v17, %v795_v54 }
 0x111   : > { %828 = vst.msk [vmem:[#allocation2 + $0x20] ss:$8 sm:$0xf] %vm1923_vm2, %v777_v7  ;;  %834 = vst.msk [vmem:[#allocation2 + $0x22] ss:$8 sm:$0xf] %vm1923_vm2, %v783_v9 }
 0x112   : > { %v734_v18 = vsub.s32 0, %v1932_v11  ;;  %v1756_v19 = vmov 0.2820948   ;;  %837 = vst.msk [vmem:[#allocation2 + $0x23] ss:$8 sm:$0xf] %vm1923_vm2, %v787_v12 }
 0x113   : > { %645 = vmatpush1.bf16.msra.mxu0 %v611_v34  ;;  %688 = vmatpush1.bf16.msra.mxu1 %v613_v28  ;;  %804 = vst.msk [vmem:[#allocation2] ss:$8 sm:$0xf] %vm1923_vm2, %v1756_v19  ;;  %843 = vst.msk [vmem:[#allocation2 + $0x25] ss:$8 sm:$0xf] %vm1923_vm2, %v792_v14 }
 0x114   : > { %646 = vmatprep.subr.bf16.mxu0 %v608_v40  ;;  %689 = vmatprep.subr.bf16.mxu1 %v610_v41  ;;  %v1957_v39 = vrot.slane %v730_v10, %v734_v18  ;;  %840 = vst.msk [vmem:[#allocation2 + $0x24] ss:$8 sm:$0xf] %vm1923_vm2, %v790_v20  ;;  %846 = vst.msk [vmem:[#allocation2 + $0x26] ss:$8 sm:$0xf] %vm1923_vm2, %v794_v35 }
 0x115   : > { %849 = vst.msk [vmem:[#allocation2 + $0x27] ss:$8 sm:$0xf] %vm1923_vm2, %v799_v36  ;;  %v742_v37 = vsub.s32 2, %v1932_v11  ;;  %v738_v31 = vsub.s32 1, %v1932_v11  ;;  %v746_v32 = vsub.s32 3, %v1932_v11 }
 0x116   : > { %v1757_v63 = vmov 1966171168   ;;  %v1699_v1 = vld [vmem:[%s2132_s4] sm:$0xff]   ;;  %v1700_v12 = vld [vmem:[%s2132_s4 + $0x8] sm:$0xff]   ;;  %v1701_v19 = vld [vmem:[%s2132_s4 + $0x10] sm:$0xff]  }
 0x117   : > { %647 = vmatpush1.bf16.msra.mxu0 %v607_v23  ;;  %690 = vmatpush1.bf16.msra.mxu1 %v609_v24  ;;  %v1966_v38 = vrot.slane %v730_v10, %v742_v37  ;;  %v739_v33 = vrot.slane %v730_v10, %v738_v31  ;;  %v747_v27 = vrot.slane %v730_v10, %v746_v32  ;;  %v1468_v0 = vunpack.c.l.s4 %v1757_v63  ;;  %v1702_v35 = vld [vmem:[%s2132_s4 + $0x18] sm:$0xff]  }
 0x119   : > { %v1469_v2 = vunpack.c.0.s8 %v1468_v0 }
 0x11a   : > { %1611 = vmatmul.mubr.msk.bf16.vlgmr.msra.gmra.mxu0 %vm628_vm1, %v1698_v25  ;;  %1612 = vmatmul.mubr.msk.bf16.vlgmr.msra.gmra.mxu1 %vm628_vm1, %v1698_v25  ;;  %v868_v23 = vld [vmem:[#allocation2 + $0x8] sm:$0xff]  ;;  %v870_v44 = vld [vmem:[#allocation2 + $0x18] sm:$0xff]  ;;  %v867_v51 = vld [vmem:[#allocation2] sm:$0xff] }
 0x11b   : > { %955 = vmatprep.mubr.bf16.mxu0 %v1755_v8  ;;  %1028 = vmatprep.mubr.bf16.mxu1 %v1755_v8  ;;  %v869_v56 = vld [vmem:[#allocation2 + $0x10] sm:$0xff]  ;;  %v1472_v10 = vsub.s32 %v1469_v2, %v1932_v11 }
 0x11c   : > { %v872_v24 = vld [vmem:[#allocation2 + $0x28] sm:$0xff]  ;;  %v874_v45 = vld [vmem:[#allocation2 + $0x38] sm:$0xff]  ;;  %v871_v55 = vld [vmem:[#allocation2 + $0x20] sm:$0xff] }
 0x11d   : > { %v884_v50 = vpack.c.bf16 %v872_v24, %v868_v23  ;;  %v886_v54 = vpack.c.bf16 %v874_v45, %v870_v44  ;;  %v873_v57 = vld [vmem:[#allocation2 + $0x30] sm:$0xff]  ;;  %v883_v60 = vpack.c.bf16 %v871_v55, %v867_v51 }
 0x11e   : > { %v885_v62 = vpack.c.bf16 %v873_v57, %v869_v56 }
 0x1da   : > { %v666_v34 = vpop.f32.mrf.mxu0  ;;  %v709_v28 = vpop.f32.mrf.mxu1 }
 0x1db   : > { %v1613_v40 = vadd.f32 -1.0, %v666_v34  ;;  %v1615_v41 = vadd.f32 -1.0, %v709_v28 }
 0x1dc   : > { %v668_v29 = vpop.f32.mrf.mxu0  ;;  %v711_v30 = vpop.f32.mrf.mxu1 }
 0x1dd   : > { %v722_v25 = vmul.f32 1.442695, %v1613_v40  ;;  %v726_v21 = vmul.f32 1.442695, %v1615_v41  ;;  %v1614_v22 = vadd.f32 -1.0, %v668_v29  ;;  %v1616_v26 = vadd.f32 -1.0, %v711_v30 }
 0x1de   : > { %v670_v42 = vpop.f32.mrf.mxu0  ;;  %v713_v43 = vpop.f32.mrf.mxu1 }
 0x1df   : > { %1707 = vpow2.f32 %v722_v25  ;;  %v724_v46 = vmul.f32 1.442695, %v1614_v22  ;;  %v728_v47 = vmul.f32 1.442695, %v1616_v26  ;;  %v887_v58 = vpack.c.bf16 %v670_v42, %v666_v34 }
 0x1e0   : > { %1709 = vpow2.f32 %v726_v21  ;;  %v672_v48 = vpop.f32.mrf.mxu0  ;;  %v715_v49 = vpop.f32.mrf.mxu1  ;;  %v889_v59 = vpack.c.bf16 %v713_v43, %v709_v28 }
 0x1e1   : > { %1711 = vpow2.f32 %v724_v46  ;;  %v888_v52 = vpack.c.bf16 %v672_v48, %v668_v29  ;;  %v890_v53 = vpack.c.bf16 %v715_v49, %v711_v30 }
 0x1e2   : > { %1713 = vpow2.f32 %v728_v47 }
 0x1e3   : > { %935 = vmatprep.subr.bf16.mxu0 %v888_v52  ;;  %1008 = vmatprep.subr.bf16.mxu1 %v890_v53 }
 0x1e4   : > { %936 = vmatpush1.bf16.msra.mxu0 %v887_v58  ;;  %1009 = vmatpush1.bf16.msra.mxu1 %v889_v59 }
 0x1e5   : > { %937 = vmatprep.subr.bf16.mxu0 %v884_v50  ;;  %1010 = vmatprep.subr.bf16.mxu1 %v886_v54 }
 0x1e8   : > { %938 = vmatpush1.bf16.msra.mxu0 %v883_v60  ;;  %1011 = vmatpush1.bf16.msra.mxu1 %v885_v62 }
 0x1eb   : > { %1626 = vmatmul.mubr.msk.bf16.vlgmr.msra.gmra.mxu0 %vm414_vm0, %v1699_v1  ;;  %1630 = vmatmul.mubr.msk.bf16.vlgmr.msra.gmra.mxu1 %vm414_vm0, %v1699_v1 }
 0x1ec   : > { %v1708_v3 = vpop.eup %1707  ;;  %965 = vmatprep.mubr.bf16.mxu0 %v1755_v8  ;;  %1038 = vmatprep.mubr.bf16.mxu1 %v1755_v8 }
 0x1ed   : > { %v1710_v4 = vpop.eup %1709  ;;  %v752_v7 = vmul.f32 %v1708_v3, %v1957_v39 }
 0x1ee   : > { %v1712_v5 = vpop.eup %1711  ;;  %v754_v13 = vmul.f32 %v1710_v4, %v1966_v38 }
 0x1ef   : > { %v1714_v6 = vpop.eup %1713  ;;  %v753_v9 = vmul.f32 %v1712_v5, %v739_v33 }
 0x1f0   : > { %v755_v14 = vmul.f32 %v1714_v6, %v747_v27 }
 0x1f1   : > { %v1465_v15 = vcombine.low %v752_v7, %v753_v9 }
 0x1f2   : > { %v1466_v16 = vcombine.low %v754_v13, %v755_v14 }
 0x1f3   : > { %v1473_v17 = vrot.slane %v1465_v15, %v1472_v10  ;;  %1627 = vmatmul.mubr.msk.bf16.gmra.mxu0 %vm414_vm0, %v1700_v12  ;;  %1631 = vmatmul.mubr.msk.bf16.gmra.mxu1 %vm414_vm0, %v1700_v12 }
 0x1f4   : > { %v1480_v18 = vrot.slane %v1466_v16, %v1472_v10  ;;  %975 = vmatprep.mubr.bf16.mxu0 %v1755_v8  ;;  %1048 = vmatprep.mubr.bf16.mxu1 %v1755_v8 }
 0x1f6   : > { %v1481_v11 = vcombine.low %v1473_v17, %v1480_v18 }
 0x1f8   : > { %v1488_v20 = vrot.slane %v1481_v11, %v1472_v10 }
 0x1fa   : > { %1490 = vst.msk [vmem:[%s1995_s22] ss:$4 sm:$0xf] %vm1923_vm2, %v1488_v20 }
 0x1fb   : > { %1628 = vmatmul.mubr.msk.bf16.gmra.mxu0 %vm414_vm0, %v1701_v19  ;;  %1632 = vmatmul.mubr.msk.bf16.gmra.mxu1 %vm414_vm0, %v1701_v19 }
 0x1fc   : > { %985 = vmatprep.mubr.bf16.mxu0 %v1755_v8  ;;  %1058 = vmatprep.mubr.bf16.mxu1 %v1755_v8 }
 0x203   : > { %1629 = vmatmul.mubr.msk.bf16.gmra.mxu0 %vm414_vm0, %v1702_v35  ;;  %1633 = vmatmul.mubr.msk.bf16.gmra.mxu1 %vm414_vm0, %v1702_v35 }
 0x204   : > { %1189 = vmatprep.mubr.bf16.mxu0 %v1755_v8  ;;  %1262 = vmatprep.mubr.bf16.mxu1 %v1755_v8 }
 0x2ab   : > { %v2011_v61 = vpop.f32.mrf.mxu0  ;;  %v2013_v36 = vpop.f32.mrf.mxu1 }
 0x2ad   : > { %v2015_v39 = vpop.f32.mrf.mxu0  ;;  %v2017_v37 = vpop.f32.mrf.mxu1 }
 0x2af   : > { %v2019_v38 = vpop.f32.mrf.mxu0  ;;  %v2021_v31 = vpop.f32.mrf.mxu1 }
 0x2b1   : > { %v2023_v32 = vpop.f32.mrf.mxu0  ;;  %v2025_v33 = vpop.f32.mrf.mxu1 }
 0x2b2   : > { %v1074_v35 = vmax.f32 %v2023_v32, 0.0  ;;  %v1075_v32 = vmax.f32 %v2021_v31, 0.0  ;;  %v1706_v31 = vld [vmem:[%s2133_s5 + $0x18] sm:$0xff]  }
 0x2b3   : > { %v2027_v27 = vpop.f32.mrf.mxu0  ;;  %v2029_v34 = vpop.f32.mrf.mxu1 }
 0x2b5   : > { %v969_v28 = vpop.f32.mrf.mxu0  ;;  %v1042_v40 = vpop.f32.mrf.mxu1 }
 0x2b6   : > { %v1078_v16 = vmax.f32 %v969_v28, 0.0  ;;  %v1080_v17 = vmax.f32 %v1042_v40, 0.0  ;;  %v1070_v28 = vmax.f32 %v2015_v39, 0.0  ;;  %v1072_v40 = vmax.f32 %v2017_v37, 0.0 }
 0x2b7   : > { %v2031_v41 = vpop.f32.mrf.mxu0  ;;  %v2033_v29 = vpop.f32.mrf.mxu1 }
 0x2b8   : > { %v1081_v18 = vmax.f32 %v2031_v41, 0.0  ;;  %v1083_v11 = vmax.f32 %v2033_v29, 0.0  ;;  %v1073_v41 = vmax.f32 %v2019_v38, 0.0  ;;  %v1703_v38 = vld [vmem:[%s2133_s5] sm:$0xff]  }
 0x2b9   : > { %v973_v30 = vpop.f32.mrf.mxu0  ;;  %v1046_v23 = vpop.f32.mrf.mxu1 }
 0x2ba   : > { %v1082_v9 = vmax.f32 %v973_v30, 0.0  ;;  %v1084_v10 = vmax.f32 %v1046_v23, 0.0  ;;  %v1076_v30 = vmax.f32 %v2025_v33, 0.0 }
 0x2bb   : > { %v977_v24 = vpop.f32.mrf.mxu0  ;;  %v1050_v25 = vpop.f32.mrf.mxu1 }
 0x2bc   : > { %v1085_v14 = vmax.f32 %v977_v24, 0.0  ;;  %v1087_v15 = vmax.f32 %v1050_v25, 0.0  ;;  %v1114_v23 = vpack.c.bf16 %v1082_v9, %v1078_v16  ;;  %v1077_v24 = vmax.f32 %v2027_v27, 0.0 }
 0x2bd   : > { %v979_v21 = vpop.f32.mrf.mxu0  ;;  %v1052_v22 = vpop.f32.mrf.mxu1  ;;  %v1079_v25 = vmax.f32 %v2029_v34, 0.0  ;;  %v1069_v27 = vmax.f32 %v2011_v61, 0.0  ;;  %v1071_v34 = vmax.f32 %v2013_v36, 0.0  ;;  %v1704_v61 = vld [vmem:[%s2133_s5 + $0x8] sm:$0xff]   ;;  %v1705_v36 = vld [vmem:[%s2133_s5 + $0x10] sm:$0xff]  }
 0x2be   : > { %v1086_v0 = vmax.f32 %v979_v21, 0.0  ;;  %v1088_v1 = vmax.f32 %v1052_v22, 0.0  ;;  %v1116_v21 = vpack.c.bf16 %v1084_v10, %v1080_v17  ;;  %v1113_v29 = vpack.c.bf16 %v1081_v18, %v1077_v24 }
 0x2bf   : > { %v981_v26 = vpop.f32.mrf.mxu0  ;;  %v1054_v42 = vpop.f32.mrf.mxu1  ;;  %v1115_v33 = vpack.c.bf16 %v1083_v11, %v1079_v25  ;;  %v1110_v22 = vpack.c.bf16 %v1074_v35, %v1070_v28  ;;  %v1109_v39 = vpack.c.bf16 %v1073_v41, %v1069_v27  ;;  %v1111_v37 = vpack.c.bf16 %v1075_v32, %v1071_v34 }
 0x2c0   : > { %v1089_v4 = vmax.f32 %v981_v26, 0.0  ;;  %v1091_v5 = vmax.f32 %v1054_v42, 0.0  ;;  %v1112_v26 = vpack.c.bf16 %v1076_v30, %v1072_v40 }
 0x2c1   : > { %v983_v43 = vpop.f32.mrf.mxu0  ;;  %v1056_v44 = vpop.f32.mrf.mxu1 }
 0x2c2   : > { %v1090_v51 = vmax.f32 %v983_v43, 0.0  ;;  %v1092_v52 = vmax.f32 %v1056_v44, 0.0  ;;  %v1117_v19 = vpack.c.bf16 %v1089_v4, %v1085_v14  ;;  %v1119_v20 = vpack.c.bf16 %v1091_v5, %v1087_v15 }
 0x2c3   : > { %v987_v45 = vpop.f32.mrf.mxu0  ;;  %v1060_v46 = vpop.f32.mrf.mxu1 }
 0x2c4   : > { %v1093_v62 = vmax.f32 %v987_v45, 0.0  ;;  %v1095_v63 = vmax.f32 %v1060_v46, 0.0  ;;  %v1118_v12 = vpack.c.bf16 %v1090_v51, %v1086_v0  ;;  %v1120_v13 = vpack.c.bf16 %v1092_v52, %v1088_v1 }
 0x2c5   : > { %v989_v47 = vpop.f32.mrf.mxu0  ;;  %v1062_v48 = vpop.f32.mrf.mxu1 }
 0x2c6   : > { %v1094_v57 = vmax.f32 %v989_v47, 0.0  ;;  %v1096_v58 = vmax.f32 %v1062_v48, 0.0 }
 0x2c7   : > { %v991_v49 = vpop.f32.mrf.mxu0  ;;  %v1064_v50 = vpop.f32.mrf.mxu1 }
 0x2c8   : > { %v1097_v53 = vmax.f32 %v991_v49, 0.0  ;;  %v1099_v54 = vmax.f32 %v1064_v50, 0.0 }
 0x2c9   : > { %v993_v55 = vpop.f32.mrf.mxu0  ;;  %v1066_v56 = vpop.f32.mrf.mxu1 }
 0x2ca   : > { %v1098_v59 = vmax.f32 %v993_v55, 0.0  ;;  %v1100_v60 = vmax.f32 %v1066_v56, 0.0  ;;  %v1121_v6 = vpack.c.bf16 %v1097_v53, %v1093_v62  ;;  %v1123_v7 = vpack.c.bf16 %v1099_v54, %v1095_v63 }
 0x2cc   : > { %v1122_v2 = vpack.c.bf16 %v1098_v59, %v1094_v57  ;;  %v1124_v3 = vpack.c.bf16 %v1100_v60, %v1096_v58 }
 0x2ce   : > { %1165 = vmatprep.subr.bf16.mxu0 %v1122_v2  ;;  %1238 = vmatprep.subr.bf16.mxu1 %v1124_v3 }
 0x2cf   : > { %1166 = vmatpush1.bf16.msra.mxu0 %v1121_v6  ;;  %1239 = vmatpush1.bf16.msra.mxu1 %v1123_v7 }
 0x2d0   : > { %1167 = vmatprep.subr.bf16.mxu0 %v1118_v12  ;;  %1240 = vmatprep.subr.bf16.mxu1 %v1120_v13 }
 0x2d3   : > { %1168 = vmatpush1.bf16.msra.mxu0 %v1117_v19  ;;  %1241 = vmatpush1.bf16.msra.mxu1 %v1119_v20 }
 0x2d4   : > { %1169 = vmatprep.subr.bf16.mxu0 %v1114_v23  ;;  %1242 = vmatprep.subr.bf16.mxu1 %v1116_v21 }
 0x2d7   : > { %1170 = vmatpush1.bf16.msra.mxu0 %v1113_v29  ;;  %1243 = vmatpush1.bf16.msra.mxu1 %v1115_v33 }
 0x2d8   : > { %1171 = vmatprep.subr.bf16.mxu0 %v1110_v22  ;;  %1244 = vmatprep.subr.bf16.mxu1 %v1112_v26 }
 0x2db   : > { %1172 = vmatpush1.bf16.msra.mxu0 %v1109_v39  ;;  %1245 = vmatpush1.bf16.msra.mxu1 %v1111_v37 }
 0x2de   : > { %1638 = vmatmul.mubr.msk.bf16.vlgmr.msra.gmra.mxu0 %vm628_vm1, %v1703_v38  ;;  %1642 = vmatmul.mubr.msk.bf16.vlgmr.msra.gmra.mxu1 %vm628_vm1, %v1703_v38 }
 0x2df   : > { %1199 = vmatprep.mubr.bf16.mxu0 %v1755_v8  ;;  %1272 = vmatprep.mubr.bf16.mxu1 %v1755_v8 }
 0x2e6   : > { %1639 = vmatmul.mubr.msk.bf16.gmra.mxu0 %vm628_vm1, %v1704_v61  ;;  %1643 = vmatmul.mubr.msk.bf16.gmra.mxu1 %vm628_vm1, %v1704_v61 }
 0x2e7   : > { %1209 = vmatprep.mubr.bf16.mxu0 %v1755_v8  ;;  %1282 = vmatprep.mubr.bf16.mxu1 %v1755_v8 }
 0x2ee   : > { %1640 = vmatmul.mubr.msk.bf16.gmra.mxu0 %vm628_vm1, %v1705_v36  ;;  %1644 = vmatmul.mubr.msk.bf16.gmra.mxu1 %vm628_vm1, %v1705_v36 }
 0x2ef   : > { %1219 = vmatprep.mubr.bf16.mxu0 %v1755_v8  ;;  %1292 = vmatprep.mubr.bf16.mxu1 %v1755_v8 }
 0x2f6   : > { %1641 = vmatmul.mubr.msk.bf16.gmra.mxu0 %vm628_vm1, %v1706_v31  ;;  %1645 = vmatmul.mubr.msk.bf16.gmra.mxu1 %vm628_vm1, %v1706_v31 }
 0x2f7   : > { %1387 = vmatprep.mubr.bf16.mxu0 %v1755_v8  ;;  %1428 = vmatprep.mubr.bf16.mxu1 %v1755_v8 }
 0x39e   : > { %v2075_v42 = vpop.f32.mrf.mxu0  ;;  %v2077_v43 = vpop.f32.mrf.mxu1 }
 0x3a0   : > { %v2079_v44 = vpop.f32.mrf.mxu0  ;;  %v2081_v45 = vpop.f32.mrf.mxu1 }
 0x3a2   : > { %v2083_v46 = vpop.f32.mrf.mxu0  ;;  %v2085_v47 = vpop.f32.mrf.mxu1 }
 0x3a4   : > { %v2087_v48 = vpop.f32.mrf.mxu0  ;;  %v2089_v49 = vpop.f32.mrf.mxu1 }
 0x3a5   : > { %v1308_v36 = vmax.f32 %v2087_v48, 0.0  ;;  %v1310_v31 = vmax.f32 %v2089_v49, 0.0  ;;  %v1309_v48 = vmax.f32 %v2085_v47, 0.0 }
 0x3a6   : > { %v2091_v50 = vpop.f32.mrf.mxu0  ;;  %v2093_v51 = vpop.f32.mrf.mxu1 }
 0x3a8   : > { %v1203_v8 = vpop.f32.mrf.mxu0  ;;  %v1276_v52 = vpop.f32.mrf.mxu1 }
 0x3a9   : > { %v1312_v27 = vmax.f32 %v1203_v8, 0.0  ;;  %v1314_v34 = vmax.f32 %v1276_v52, 0.0  ;;  %v1304_v8 = vmax.f32 %v2079_v44, 0.0  ;;  %v1306_v52 = vmax.f32 %v2081_v45, 0.0 }
 0x3aa   : > { %v2095_v53 = vpop.f32.mrf.mxu0  ;;  %v2097_v54 = vpop.f32.mrf.mxu1 }
 0x3ab   : > { %v1315_v39 = vmax.f32 %v2095_v53, 0.0  ;;  %v1317_v37 = vmax.f32 %v2097_v54, 0.0  ;;  %v1307_v53 = vmax.f32 %v2083_v46, 0.0  ;;  %v1335_v46 = vld [vmem:[%s2134_s6] sm:$0x3] }
 0x3ac   : > { %v1207_v55 = vpop.f32.mrf.mxu0  ;;  %v1280_v56 = vpop.f32.mrf.mxu1 }
 0x3ad   : > { %v1316_v41 = vmax.f32 %v1207_v55, 0.0  ;;  %v1318_v32 = vmax.f32 %v1280_v56, 0.0 }
 0x3ae   : > { %v1211_v57 = vpop.f32.mrf.mxu0  ;;  %v1284_v58 = vpop.f32.mrf.mxu1 }
 0x3af   : > { %v1319_v22 = vmax.f32 %v1211_v57, 0.0  ;;  %v1321_v26 = vmax.f32 %v1284_v58, 0.0  ;;  %v1341_v55 = vpack.c.bf16 %v1316_v41, %v1312_v27  ;;  %v1343_v56 = vpack.c.bf16 %v1318_v32, %v1314_v34 }
 0x3b0   : > { %v1213_v59 = vpop.f32.mrf.mxu0  ;;  %v1286_v60 = vpop.f32.mrf.mxu1  ;;  %v1311_v57 = vmax.f32 %v2091_v50, 0.0  ;;  %v1313_v58 = vmax.f32 %v2093_v51, 0.0  ;;  %v1303_v50 = vmax.f32 %v2075_v42, 0.0  ;;  %v1305_v51 = vmax.f32 %v2077_v43, 0.0 }
 0x3b1   : > { %v1320_v35 = vmax.f32 %v1213_v59, 0.0  ;;  %v1322_v30 = vmax.f32 %v1286_v60, 0.0  ;;  %v1337_v59 = vpack.c.bf16 %v1308_v36, %v1304_v8  ;;  %v1339_v60 = vpack.c.bf16 %v1310_v31, %v1306_v52 }
 0x3b2   : > { %v1215_v62 = vpop.f32.mrf.mxu0  ;;  %v1288_v63 = vpop.f32.mrf.mxu1  ;;  %v1340_v54 = vpack.c.bf16 %v1315_v39, %v1311_v57  ;;  %v1342_v49 = vpack.c.bf16 %v1317_v37, %v1313_v58  ;;  %v1336_v44 = vpack.c.bf16 %v1307_v53, %v1303_v50  ;;  %v1338_v45 = vpack.c.bf16 %v1309_v48, %v1305_v51 }
 0x3b3   : > { %v1323_v24 = vmax.f32 %v1215_v62, 0.0  ;;  %v1325_v25 = vmax.f32 %v1288_v63, 0.0 }
 0x3b4   : > { %v1217_v0 = vpop.f32.mrf.mxu0  ;;  %v1290_v1 = vpop.f32.mrf.mxu1 }
 0x3b5   : > { %v1324_v9 = vmax.f32 %v1217_v0, 0.0  ;;  %v1326_v10 = vmax.f32 %v1290_v1, 0.0  ;;  %v1344_v38 = vpack.c.bf16 %v1323_v24, %v1319_v22  ;;  %v1346_v61 = vpack.c.bf16 %v1325_v25, %v1321_v26 }
 0x3b6   : > { %v1221_v2 = vpop.f32.mrf.mxu0  ;;  %v1294_v3 = vpop.f32.mrf.mxu1 }
 0x3b7   : > { %v1327_v19 = vmax.f32 %v1221_v2, 0.0  ;;  %v1329_v20 = vmax.f32 %v1294_v3, 0.0  ;;  %v1345_v29 = vpack.c.bf16 %v1324_v9, %v1320_v35  ;;  %v1347_v33 = vpack.c.bf16 %v1326_v10, %v1322_v30 }
 0x3b8   : > { %v1223_v4 = vpop.f32.mrf.mxu0  ;;  %v1296_v5 = vpop.f32.mrf.mxu1 }
 0x3b9   : > { %v1328_v16 = vmax.f32 %v1223_v4, 0.0  ;;  %v1330_v17 = vmax.f32 %v1296_v5, 0.0 }
 0x3ba   : > { %v1225_v6 = vpop.f32.mrf.mxu0  ;;  %v1298_v7 = vpop.f32.mrf.mxu1 }
 0x3bb   : > { %v1331_v12 = vmax.f32 %v1225_v6, 0.0  ;;  %v1333_v13 = vmax.f32 %v1298_v7, 0.0 }
 0x3bc   : > { %v1227_v14 = vpop.f32.mrf.mxu0  ;;  %v1300_v15 = vpop.f32.mrf.mxu1 }
 0x3bd   : > { %v1332_v18 = vmax.f32 %v1227_v14, 0.0  ;;  %v1334_v11 = vmax.f32 %v1300_v15, 0.0  ;;  %v1348_v28 = vpack.c.bf16 %v1331_v12, %v1327_v19  ;;  %v1350_v40 = vpack.c.bf16 %v1333_v13, %v1329_v20 }
 0x3bf   : > { %v1349_v23 = vpack.c.bf16 %v1332_v18, %v1328_v16  ;;  %v1351_v21 = vpack.c.bf16 %v1334_v11, %v1330_v17 }
 0x3c1   : > { %1363 = vmatprep.subr.bf16.mxu0 %v1349_v23  ;;  %1404 = vmatprep.subr.bf16.mxu1 %v1351_v21 }
 0x3c2   : > { %1364 = vmatpush1.bf16.msra.mxu0 %v1348_v28  ;;  %1405 = vmatpush1.bf16.msra.mxu1 %v1350_v40 }
 0x3c3   : > { %1365 = vmatprep.subr.bf16.mxu0 %v1345_v29  ;;  %1406 = vmatprep.subr.bf16.mxu1 %v1347_v33 }
 0x3c6   : > { %1366 = vmatpush1.bf16.msra.mxu0 %v1344_v38  ;;  %1407 = vmatpush1.bf16.msra.mxu1 %v1346_v61 }
 0x3c7   : > { %1367 = vmatprep.subr.bf16.mxu0 %v1341_v55  ;;  %1408 = vmatprep.subr.bf16.mxu1 %v1343_v56 }
 0x3ca   : > { %1368 = vmatpush1.bf16.msra.mxu0 %v1340_v54  ;;  %1409 = vmatpush1.bf16.msra.mxu1 %v1342_v49 }
 0x3cb   : > { %1369 = vmatprep.subr.bf16.mxu0 %v1337_v59  ;;  %1410 = vmatprep.subr.bf16.mxu1 %v1339_v60 }
 0x3ce   : > { %1370 = vmatpush1.bf16.msra.mxu0 %v1336_v44  ;;  %1411 = vmatpush1.bf16.msra.mxu1 %v1338_v45 }
 0x3d1   : > { %1646 = vmatmul.mubr.msk.bf16.vlgmr.msra.gmra.mxu0 %vm628_vm1, %v1335_v46  ;;  %1647 = vmatmul.mubr.msk.bf16.vlgmr.msra.gmra.mxu1 %vm628_vm1, %v1335_v46 }
 0x491   : > { %v1389_v47 = vpop.f32.mrf.mxu0  ;;  %v1430_v42 = vpop.f32.mrf.mxu1 }
 0x492   : > { %v1648_v62 = vmul.f32 -1.442695, %v1389_v47  ;;  %v1650_v43 = vmul.f32 -1.442695, %v1430_v42 }
 0x493   : > { %v1391_v63 = vpop.f32.mrf.mxu0  ;;  %v1432_v0 = vpop.f32.mrf.mxu1 }
 0x494   : > { %1715 = vpow2.f32 %v1648_v62  ;;  %v1649_v1 = vmul.f32 -1.442695, %v1391_v63  ;;  %v1651_v2 = vmul.f32 -1.442695, %v1432_v0 }
 0x495   : > { %1717 = vpow2.f32 %v1650_v43  ;;  %v1393_v3 = vpop.f32.mrf.mxu0  ;;  %v1434_v4 = vpop.f32.mrf.mxu1 }
 0x496   : > { %1719 = vpow2.f32 %v1649_v1 }
 0x497   : > { %1721 = vpow2.f32 %v1651_v2  ;;  %v1394_v5 = vpop.f32.mrf.mxu0  ;;  %v1435_v6 = vpop.f32.mrf.mxu1 }
 0x4a1   : > { %v1716_v7 = vpop.eup %1715 }
 0x4a2   : > { %v1718_v9 = vpop.eup %1717  ;;  %v1449_v10 = vadd.f32 1.0, %v1716_v7 }
 0x4a3   : > { %v1720_v12 = vpop.eup %1719  ;;  %v1451_v13 = vadd.f32 1.0, %v1718_v9 }
 0x4a4   : > { %v1722_v14 = vpop.eup %1721  ;;  %1723 = vrcp.f32 %v1449_v10  ;;  %v1450_v15 = vadd.f32 1.0, %v1720_v12 }
 0x4a5   : > { %1725 = vrcp.f32 %v1451_v13  ;;  %v1452_v16 = vadd.f32 1.0, %v1722_v14 }
 0x4a6   : > { %1727 = vrcp.f32 %v1450_v15 }
 0x4a7   : > { %1729 = vrcp.f32 %v1452_v16 }
 0x4b1   : > { %v1724_v17 = vpop.eup %1723 }
 0x4b2   : > { %v1726_v18 = vpop.eup %1725 }
 0x4b3   : > { %v1728_v11 = vpop.eup %1727 }
 0x4b4   : > { %v1730_v19 = vpop.eup %1729  ;;  %v1495_v20 = vcombine.low %v1724_v17, %v1728_v11 }
 0x4b5   : > { %v1496_v35 = vcombine.low %v1726_v18, %v1730_v19 }
 0x4b6   : > { %v1497_v30 = vrot.slane %v1495_v20, 7 }
 0x4b7   : > { %v1498_v23 = vrot.slane %v1496_v35, 7 }
 0x4b8   : > { %1501 = vst [vmem:[%s1995_s22] sm:$0xee] %v1497_v30 }
 0x4b9   : > { %1502 = vst [vmem:[%s1995_s22 + $0x8] sm:$0xee] %v1498_v23 }
 0x4ba PF: > { %p14_p9 = scmp.ge.s32.totalorder %s1815_s28, 5   ;;  %s2138_s24 = smov %s1749_s25 }
 0x4bb   : > { %s2139_s25 = smov %s1824_s8  ;;  %s2140_s26 = smov %s1815_s28 }
 0x4bc   :  { %16 = sbr.rel (!%p14_p9) target bundleno = 2 (0x2), region = 127 }

</bundles_post_ra>
